<compile_context>
chip_gen: v7x
topology: tpu7x:2x2x1
jax: 0.10.0
libtpu: 0.0.40
codegen_flags: <defaults>
</compile_context>

<pallas_src>
import functools

import jax
import jax.numpy as jnp
from jax.experimental import pallas as pl
from jax.experimental.pallas import tpu as pltpu


def _st_gcn_kernel(x_ref, a_ref, wg_ref, wr_ref, wt_ref, bias1_ref, bout_ref,
                   out_ref, *, K, C_in, C_out, N_b):
    TV = x_ref.shape[-1]
    x = x_ref[...]                                        # (N_b, C_in, TV)
    x_flat = x.reshape(N_b * C_in, TV)

    # Reassociated graph contraction, batched over the whole sample block:
    #   xa[k] = x @ A[k]   (contract over source node v; lane-dense in w).
    xa = [jnp.dot(x_flat, a_ref[k], preferred_element_type=jnp.float32)
            .reshape(N_b, C_in, TV)
          for k in range(K)]

    wg = wg_ref[...]                                      # (K, C_out, C_in)  BN1-folded
    wr = wr_ref[...]                                      # (C_out, C_in)     BNr-folded
    wt = wt_ref[...]                                      # (C_out, C_out)    BN2-folded
    bias1 = bias1_ref[...]                                # (C_out, TV)
    b_out = bout_ref[...]                                 # (C_out, 1)

    for n in range(N_b):                                  # N_b is small & static
        g = bias1
        for k in range(K):
            g = g + jnp.dot(wg[k], xa[k][n],
                            preferred_element_type=jnp.float32)
        y = jnp.maximum(g, 0.0)                           # BN1 folded; ReLU
        o = (jnp.dot(wt, y, preferred_element_type=jnp.float32)      # tcn conv + BN2
             + jnp.dot(wr, x[n], preferred_element_type=jnp.float32)  # residual conv + BNr
             + b_out)
        out_ref[n] = jnp.maximum(o, 0.0)                  # final ReLU


def _bn_affine(gamma, beta, mean, var, eps=1e-5):
    scale = gamma / jnp.sqrt(var + eps)
    return scale, beta - mean * scale


def _fold_params(p, A):
    """Fold eval-mode BN affines and conv biases into channels-first weights."""
    K = A.shape[0]
    C_out, C_in = p["w_res"].shape

    s1, t1 = _bn_affine(p["bn1_gamma"], p["bn1_beta"], p["bn1_mean"], p["bn1_var"])
    s2, t2 = _bn_affine(p["bn2_gamma"], p["bn2_beta"], p["bn2_mean"], p["bn2_var"])
    sr, tr = _bn_affine(p["bnr_gamma"], p["bnr_beta"], p["bnr_mean"], p["bnr_var"])

    # residual 1x1 conv followed by BN -> single affine
    wr = sr[:, None] * p["w_res"]                         # (C_out, C_in)
    br = sr * p["b_res"] + tr                             # (C_out,)

    # gcn 1x1 conv with BN1 scale folded per output channel
    wg = s1[None, :, None] * p["w_gcn"].reshape(K, C_out, C_in)   # (K, C_out, C_in)
    bg = s1[None, :] * p["b_gcn"].reshape(K, C_out)               # (K, C_out)

    # the gcn bias passes linearly through the A contraction:
    #   sum_k bg[k,c] * (sum_v A[k,v,w]);  fold it together with the BN1 shift.
    colsum = A.sum(axis=1)                                # (K, TV)
    bias1 = (jnp.einsum("kc,kw->cw", bg, colsum,
                        precision=jax.lax.Precision.HIGHEST)
             + t1[:, None])                               # (C_out, TV)

    # tcn 1x1 conv followed by BN2; merge its bias with the residual bias
    wt = s2[:, None] * p["w_tcn"]                         # (C_out, C_out)
    b_out = (s2 * p["b_tcn"] + t2 + br)[:, None]          # (C_out, 1)

    return wg, wr, wt, bias1, b_out


def _pick_block_n(N, max_block=8):
    # Amortize per-step pipeline overhead, but keep >=2 grid steps when
    # possible so v7x's two TensorCores both get work.
    nb = min(max_block, max(1, N // 2)) if N >= 2 else 1
    while N % nb:
        nb -= 1
    return nb


def st_gcn_forward(x_nchw, A, params, *, block_n=None):
    """x_nchw: (N, C_in, 1, T*V) f32;  A: (K, T*V, T*V) f32.  Returns (out, A)."""
    N, C_in, _, TV = x_nchw.shape
    K = A.shape[0]
    C_out = params["w_tcn"].shape[0]
    N_b = block_n if block_n is not None else _pick_block_n(N)
    assert N % N_b == 0

    # channels-first kernel layout: just drop the singleton H axis (no HBM
    # transpose passes on input or output).
    x = x_nchw[:, :, 0, :]                                # (N, C_in, TV)
    wg, wr, wt, bias1, b_out = _fold_params(params, A)

    kernel = functools.partial(_st_gcn_kernel, K=K, C_in=C_in, C_out=C_out, N_b=N_b)

    def inv(arr):  # grid-invariant (weights / A): full block, fixed index
        nd = arr.ndim
        return pl.BlockSpec(arr.shape, lambda i: (0,) * nd)

    out = pl.pallas_call(
        kernel,
        out_shape=jax.ShapeDtypeStruct((N, C_out, TV), jnp.float32),
        grid=(N // N_b,),
        in_specs=[
            pl.BlockSpec((N_b, C_in, TV), lambda i: (i, 0, 0)),   # x
            inv(A), inv(wg), inv(wr), inv(wt), inv(bias1), inv(b_out),
        ],
        out_specs=pl.BlockSpec((N_b, C_out, TV), lambda i: (i, 0, 0)),
        compiler_params=pltpu.CompilerParams(
            dimension_semantics=("parallel",),
            vmem_limit_bytes=32 * 1024 * 1024),
    )(x, A, wg, wr, wt, bias1, b_out)

    return out[:, :, None, :], A


def make_params(key, C_in, C_out, K):
    """Raw (PyTorch-style) parameters: conv weights (out, in), per-channel BN stats."""
    ks = jax.random.split(key, 9)
    w_gcn = 0.1 * jax.random.normal(ks[0], (K * C_out, C_in), jnp.float32)
    b_gcn = 0.1 * jax.random.normal(ks[1], (K * C_out,), jnp.float32)
    w_tcn = 0.1 * jax.random.normal(ks[2], (C_out, C_out), jnp.float32)
    b_tcn = 0.1 * jax.random.normal(ks[3], (C_out,), jnp.float32)
    w_res = 0.1 * jax.random.normal(ks[4], (C_out, C_in), jnp.float32)
    b_res = 0.1 * jax.random.normal(ks[5], (C_out,), jnp.float32)

    def bn(k):
        k1, k2, k3, k4 = jax.random.split(k, 4)
        return dict(
            gamma=1.0 + 0.1 * jax.random.normal(k1, (C_out,), jnp.float32),
            beta=0.1 * jax.random.normal(k2, (C_out,), jnp.float32),
            mean=0.05 * jax.random.normal(k3, (C_out,), jnp.float32),
            var=1.0 + 0.1 * jnp.abs(jax.random.normal(k4, (C_out,), jnp.float32)),
        )

    p = dict(w_gcn=w_gcn, b_gcn=b_gcn, w_tcn=w_tcn, b_tcn=b_tcn,
             w_res=w_res, b_res=b_res)
    for name, k in (("bn1", ks[6]), ("bn2", ks[7]), ("bnr", ks[8])):
        for f, v in bn(k).items():
            p[f"{name}_{f}"] = v
    return p


def reference_forward(x_nchw, A, p, eps=1e-5):
    """Pure-JAX reference mirroring the PyTorch forward (eval mode)."""
    N, C_in, _, TV = x_nchw.shape
    K = A.shape[0]
    C_out = p["w_tcn"].shape[0]
    hp = jax.lax.Precision.HIGHEST
    x = x_nchw[:, :, 0, :]                                # (N, C_in, TV)

    def bn(v, name):
        s = p[f"{name}_gamma"] / jnp.sqrt(p[f"{name}_var"] + eps)
        t = p[f"{name}_beta"] - p[f"{name}_mean"] * s
        return v * s[None, :, None] + t[None, :, None]

    res = jnp.einsum("oc,ncv->nov", p["w_res"], x, precision=hp) + p["b_res"][None, :, None]
    res = bn(res, "bnr")

    h = jnp.einsum("oc,ncv->nov", p["w_gcn"], x, precision=hp) + p["b_gcn"][None, :, None]
    h = h.reshape(N, K, C_out, TV)
    g = jnp.einsum("nkcv,kvw->ncw", h, A, precision=hp)

    y = bn(g, "bn1")
    y = jnp.maximum(y, 0.0)
    y = jnp.einsum("oc,ncv->nov", p["w_tcn"], y, precision=hp) + p["b_tcn"][None, :, None]
    y = bn(y, "bn2")
    out = jnp.maximum(y + res, 0.0)
    return out[:, :, None, :], A


if __name__ == "__main__":
    N, C_in, C_out, K = 2, 4, 16, 3
    T, V = 8, 16
    TV = T * V

    key = jax.random.PRNGKey(0)
    kx, ka, kp = jax.random.split(key, 3)
    x = jax.random.normal(kx, (N, C_in, 1, TV), jnp.float32)
    A = jax.random.uniform(ka, (K, TV, TV), jnp.float32)
    params = make_params(kp, C_in, C_out, K)

    out, A_out = st_gcn_forward(x, A, params)
    out = jax.block_until_ready(out)

    ref, _ = reference_forward(x, A, params)
    assert out.shape == (N, C_out, 1, TV)
    err = float(jnp.max(jnp.abs(out - ref)))
    assert jnp.allclose(out, ref, rtol=1e-3, atol=1e-3), err
    assert jnp.array_equal(A_out, A)

    print("KERNEL_OK")
</pallas_src>

<mosaic_0001>
module attributes {stable_mosaic.version = 11 : i64} {
  func.func @_st_gcn_kernel(%arg0: i32, %arg1: memref<1x4x128xf32, #tpu.memory_space<vmem>>, %arg2: memref<3x128x128xf32, #tpu.memory_space<vmem>>, %arg3: memref<3x16x4xf32, #tpu.memory_space<vmem>>, %arg4: memref<16x4xf32, #tpu.memory_space<vmem>>, %arg5: memref<16x16xf32, #tpu.memory_space<vmem>>, %arg6: memref<16x128xf32, #tpu.memory_space<vmem>>, %arg7: memref<16x1xf32, #tpu.memory_space<vmem>>, %arg8: memref<1x16x128xf32, #tpu.memory_space<vmem>>) attributes {dimension_semantics = [#tpu.dimension_semantics<parallel>], iteration_bounds = array<i64: 2>, scalar_prefetch = 0 : i64, scratch_operands = 0 : i64, tpu.core_type = #tpu.core_type<tc>, window_params = [{transform_indices = @transform_0, window_bounds = array<i64: 1, 4, 128>}, {pipeline_mode = #tpu.pipeline_mode<synchronous>, transform_indices = @transform_1, window_bounds = array<i64: 3, 128, 128>}, {pipeline_mode = #tpu.pipeline_mode<synchronous>, transform_indices = @transform_2, window_bounds = array<i64: 3, 16, 4>}, {pipeline_mode = #tpu.pipeline_mode<synchronous>, transform_indices = @transform_3, window_bounds = array<i64: 16, 4>}, {pipeline_mode = #tpu.pipeline_mode<synchronous>, transform_indices = @transform_4, window_bounds = array<i64: 16, 16>}, {pipeline_mode = #tpu.pipeline_mode<synchronous>, transform_indices = @transform_5, window_bounds = array<i64: 16, 128>}, {pipeline_mode = #tpu.pipeline_mode<synchronous>, transform_indices = @transform_6, window_bounds = array<i64: 16, 1>}, {transform_indices = @transform_7, window_bounds = array<i64: 1, 16, 128>}]} {
    %c0 = arith.constant 0 : index
    %c0_0 = arith.constant 0 : index
    %c0_1 = arith.constant 0 : index
    %0 = vector.load %arg1[%c0, %c0_0, %c0_1] : memref<1x4x128xf32, #tpu.memory_space<vmem>>, vector<1x4x128xf32>
    %1 = vector.shape_cast %0 : vector<1x4x128xf32> to vector<4x128xf32>
    %c0_2 = arith.constant 0 : index
    %c0_3 = arith.constant 0 : index
    %c0_4 = arith.constant 0 : index
    %2 = vector.load %arg2[%c0_2, %c0_3, %c0_4] : memref<3x128x128xf32, #tpu.memory_space<vmem>>, vector<1x128x128xf32>
    %3 = vector.shape_cast %2 : vector<1x128x128xf32> to vector<128x128xf32>
    %cst = arith.constant dense<0.000000e+00> : vector<4x128xf32>
    %4 = tpu.matmul %1, %3, %cst {dimension_numbers = #tpu.dot_dimension_numbers<[1], [0], [0], [1], [0, 0, 1, 1], [], []>} : vector<4x128xf32>, vector<128x128xf32>, vector<4x128xf32> -> vector<4x128xf32>
    %5 = vector.shape_cast %4 : vector<4x128xf32> to vector<1x4x128xf32>
    %c1 = arith.constant 1 : index
    %c0_5 = arith.constant 0 : index
    %c0_6 = arith.constant 0 : index
    %6 = vector.load %arg2[%c1, %c0_5, %c0_6] : memref<3x128x128xf32, #tpu.memory_space<vmem>>, vector<1x128x128xf32>
    %7 = vector.shape_cast %6 : vector<1x128x128xf32> to vector<128x128xf32>
    %cst_7 = arith.constant dense<0.000000e+00> : vector<4x128xf32>
    %8 = tpu.matmul %1, %7, %cst_7 {dimension_numbers = #tpu.dot_dimension_numbers<[1], [0], [0], [1], [0, 0, 1, 1], [], []>} : vector<4x128xf32>, vector<128x128xf32>, vector<4x128xf32> -> vector<4x128xf32>
    %9 = vector.shape_cast %8 : vector<4x128xf32> to vector<1x4x128xf32>
    %c2 = arith.constant 2 : index
    %c0_8 = arith.constant 0 : index
    %c0_9 = arith.constant 0 : index
    %10 = vector.load %arg2[%c2, %c0_8, %c0_9] : memref<3x128x128xf32, #tpu.memory_space<vmem>>, vector<1x128x128xf32>
    %11 = vector.shape_cast %10 : vector<1x128x128xf32> to vector<128x128xf32>
    %cst_10 = arith.constant dense<0.000000e+00> : vector<4x128xf32>
    %12 = tpu.matmul %1, %11, %cst_10 {dimension_numbers = #tpu.dot_dimension_numbers<[1], [0], [0], [1], [0, 0, 1, 1], [], []>} : vector<4x128xf32>, vector<128x128xf32>, vector<4x128xf32> -> vector<4x128xf32>
    %13 = vector.shape_cast %12 : vector<4x128xf32> to vector<1x4x128xf32>
    %c0_11 = arith.constant 0 : index
    %c0_12 = arith.constant 0 : index
    %c0_13 = arith.constant 0 : index
    %14 = vector.load %arg3[%c0_11, %c0_12, %c0_13] : memref<3x16x4xf32, #tpu.memory_space<vmem>>, vector<3x16x4xf32>
    %c0_14 = arith.constant 0 : index
    %c0_15 = arith.constant 0 : index
    %15 = vector.load %arg4[%c0_14, %c0_15] : memref<16x4xf32, #tpu.memory_space<vmem>>, vector<16x4xf32>
    %c0_16 = arith.constant 0 : index
    %c0_17 = arith.constant 0 : index
    %16 = vector.load %arg5[%c0_16, %c0_17] : memref<16x16xf32, #tpu.memory_space<vmem>>, vector<16x16xf32>
    %c0_18 = arith.constant 0 : index
    %c0_19 = arith.constant 0 : index
    %17 = vector.load %arg6[%c0_18, %c0_19] : memref<16x128xf32, #tpu.memory_space<vmem>>, vector<16x128xf32>
    %c0_20 = arith.constant 0 : index
    %c0_21 = arith.constant 0 : index
    %18 = vector.load %arg7[%c0_20, %c0_21] : memref<16x1xf32, #tpu.memory_space<vmem>>, vector<16x1xf32>
    %19 = vector.extract_strided_slice %14 {offsets = [0, 0, 0], sizes = [1, 16, 4], strides = [1, 1, 1]} : vector<3x16x4xf32> to vector<1x16x4xf32>
    %20 = vector.shape_cast %19 : vector<1x16x4xf32> to vector<16x4xf32>
    %21 = vector.shape_cast %5 : vector<1x4x128xf32> to vector<4x128xf32>
    %cst_22 = arith.constant dense<0.000000e+00> : vector<16x128xf32>
    %22 = tpu.matmul %20, %21, %cst_22 {dimension_numbers = #tpu.dot_dimension_numbers<[1], [0], [0], [1], [0, 0, 1, 1], [], []>} : vector<16x4xf32>, vector<4x128xf32>, vector<16x128xf32> -> vector<16x128xf32>
    %23 = arith.addf %17, %22 : vector<16x128xf32>
    %24 = vector.extract_strided_slice %14 {offsets = [1, 0, 0], sizes = [1, 16, 4], strides = [1, 1, 1]} : vector<3x16x4xf32> to vector<1x16x4xf32>
    %25 = vector.shape_cast %24 : vector<1x16x4xf32> to vector<16x4xf32>
    %26 = vector.shape_cast %9 : vector<1x4x128xf32> to vector<4x128xf32>
    %cst_23 = arith.constant dense<0.000000e+00> : vector<16x128xf32>
    %27 = tpu.matmul %25, %26, %cst_23 {dimension_numbers = #tpu.dot_dimension_numbers<[1], [0], [0], [1], [0, 0, 1, 1], [], []>} : vector<16x4xf32>, vector<4x128xf32>, vector<16x128xf32> -> vector<16x128xf32>
    %28 = arith.addf %23, %27 : vector<16x128xf32>
    %29 = vector.extract_strided_slice %14 {offsets = [2, 0, 0], sizes = [1, 16, 4], strides = [1, 1, 1]} : vector<3x16x4xf32> to vector<1x16x4xf32>
    %30 = vector.shape_cast %29 : vector<1x16x4xf32> to vector<16x4xf32>
    %31 = vector.shape_cast %13 : vector<1x4x128xf32> to vector<4x128xf32>
    %cst_24 = arith.constant dense<0.000000e+00> : vector<16x128xf32>
    %32 = tpu.matmul %30, %31, %cst_24 {dimension_numbers = #tpu.dot_dimension_numbers<[1], [0], [0], [1], [0, 0, 1, 1], [], []>} : vector<16x4xf32>, vector<4x128xf32>, vector<16x128xf32> -> vector<16x128xf32>
    %33 = arith.addf %28, %32 : vector<16x128xf32>
    %cst_25 = arith.constant 0.000000e+00 : f32
    %34 = vector.broadcast %cst_25 : f32 to vector<16x128xf32>
    %35 = arith.maximumf %33, %34 : vector<16x128xf32>
    %cst_26 = arith.constant dense<0.000000e+00> : vector<16x128xf32>
    %36 = tpu.matmul %16, %35, %cst_26 {dimension_numbers = #tpu.dot_dimension_numbers<[1], [0], [0], [1], [0, 0, 1, 1], [], []>} : vector<16x16xf32>, vector<16x128xf32>, vector<16x128xf32> -> vector<16x128xf32>
    %37 = vector.shape_cast %0 : vector<1x4x128xf32> to vector<4x128xf32>
    %cst_27 = arith.constant dense<0.000000e+00> : vector<16x128xf32>
    %38 = tpu.matmul %15, %37, %cst_27 {dimension_numbers = #tpu.dot_dimension_numbers<[1], [0], [0], [1], [0, 0, 1, 1], [], []>} : vector<16x4xf32>, vector<4x128xf32>, vector<16x128xf32> -> vector<16x128xf32>
    %39 = arith.addf %36, %38 : vector<16x128xf32>
    %40 = vector.broadcast %18 : vector<16x1xf32> to vector<16x128xf32>
    %41 = arith.addf %39, %40 : vector<16x128xf32>
    %cst_28 = arith.constant 0.000000e+00 : f32
    %42 = vector.broadcast %cst_28 : f32 to vector<16x128xf32>
    %43 = arith.maximumf %41, %42 : vector<16x128xf32>
    %c0_29 = arith.constant 0 : index
    %c0_30 = arith.constant 0 : index
    %c0_31 = arith.constant 0 : index
    %44 = vector.load %arg8[%c0_29, %c0_30, %c0_31] : memref<1x16x128xf32, #tpu.memory_space<vmem>>, vector<1x16x128xf32>
    %45 = vector.shape_cast %44 : vector<1x16x128xf32> to vector<16x128xf32>
    %46 = vector.shape_cast %43 : vector<16x128xf32> to vector<1x16x128xf32>
    tpu.vector_store %arg8[%c0_29, %c0_30, %c0_31], %46 {strides = array<i32>} : memref<1x16x128xf32, #tpu.memory_space<vmem>>, vector<1x16x128xf32>,
    return
  }
  func.func @transform_0(%arg0: i32) -> (i32, i32, i32) {
    %c0_i32 = arith.constant 0 : i32
    %c0_i32_0 = arith.constant 0 : i32
    %c0_i32_1 = arith.constant 0 : i32
    return %arg0, %c0_i32, %c0_i32_0 : i32, i32, i32
  }
  func.func @transform_1(%arg0: i32) -> (i32, i32, i32) {
    %c0_i32 = arith.constant 0 : i32
    %c0_i32_0 = arith.constant 0 : i32
    %c0_i32_1 = arith.constant 0 : i32
    %c0_i32_2 = arith.constant 0 : i32
    return %c0_i32, %c0_i32_0, %c0_i32_1 : i32, i32, i32
  }
  func.func @transform_2(%arg0: i32) -> (i32, i32, i32) {
    %c0_i32 = arith.constant 0 : i32
    %c0_i32_0 = arith.constant 0 : i32
    %c0_i32_1 = arith.constant 0 : i32
    %c0_i32_2 = arith.constant 0 : i32
    return %c0_i32, %c0_i32_0, %c0_i32_1 : i32, i32, i32
  }
  func.func @transform_3(%arg0: i32) -> (i32, i32) {
    %c0_i32 = arith.constant 0 : i32
    %c0_i32_0 = arith.constant 0 : i32
    %c0_i32_1 = arith.constant 0 : i32
    return %c0_i32, %c0_i32_0 : i32, i32
  }
  func.func @transform_4(%arg0: i32) -> (i32, i32) {
    %c0_i32 = arith.constant 0 : i32
    %c0_i32_0 = arith.constant 0 : i32
    %c0_i32_1 = arith.constant 0 : i32
    return %c0_i32, %c0_i32_0 : i32, i32
  }
  func.func @transform_5(%arg0: i32) -> (i32, i32) {
    %c0_i32 = arith.constant 0 : i32
    %c0_i32_0 = arith.constant 0 : i32
    %c0_i32_1 = arith.constant 0 : i32
    return %c0_i32, %c0_i32_0 : i32, i32
  }
  func.func @transform_6(%arg0: i32) -> (i32, i32) {
    %c0_i32 = arith.constant 0 : i32
    %c0_i32_0 = arith.constant 0 : i32
    %c0_i32_1 = arith.constant 0 : i32
    return %c0_i32, %c0_i32_0 : i32, i32
  }
  func.func @transform_7(%arg0: i32) -> (i32, i32, i32) {
    %c0_i32 = arith.constant 0 : i32
    %c0_i32_0 = arith.constant 0 : i32
    %c0_i32_1 = arith.constant 0 : i32
    return %arg0, %c0_i32, %c0_i32_0 : i32, i32, i32
  }
}

</mosaic_0001>

<bundles_post_ra>
// kernel: tpu_custom_call.1
= control target key start
LH: loop header
LB: loop body
LE: loop exit
PB: predicated region body
PF: predicated region fallthrough
CT: control target
= control target key end

     0   :  { %12 = vsyncpa [#allocation3], 0  ;;  %s1847_s0 = inlined_call_operand.vmem [shape: f32[2,4,128], index: 0, kind: input, shape index: {}]   ;;  %s1848_s1 = inlined_call_operand.hbm [shape: f32[3,128,128], index: 1, kind: input, shape index: {}]   ;;  %s1849_s2 = inlined_call_operand.vmem [shape: f32[3,16,4], index: 2, kind: input, shape index: {}]   ;;  %s1850_s3 = inlined_call_operand.vmem [shape: f32[16,4], index: 3, kind: input, shape index: {}]   ;;  %s1851_s4 = inlined_call_operand.vmem [shape: f32[16,16], index: 4, kind: input, shape index: {}]   ;;  %s1852_s5 = inlined_call_operand.vmem [shape: f32[16,128], index: 5, kind: input, shape index: {}]   ;;  %s1853_s6 = inlined_call_operand.vmem [shape: f32[16,1], index: 6, kind: input, shape index: {}]   ;;  %s1854_s7 = inlined_call_operand.hbm [shape: f32[2,16,128], index: 7, kind: output, shape index: {}]  }
   0x1   :  { %13 = vsyncpa [#allocation4], 0 }
   0x2   :  { %15 = vsyncpa [#allocation4 + $0x1], 0  ;;  %s1612_s24 = smov 0   ;;  %s1614_s25 = smov 0  }
   0x3   :  { %s1616_s26 = smov 0   ;;  %s1618_s27 = smov 0  }
   0x4 LB: > { %s1633_s28 = sadd.s32 4294967295, %s1560_s27   ;;  %s1096_s29 = sadd.s32 4294967294, %s1560_s27   ;;  %s1560_s27 = sphi %s1618_s27, %s1870_s27   ;;  %s1556_s26 = sphi %s1616_s26, %s1869_s26   ;;  %s1552_s25 = sphi %s1614_s25, %s1868_s25   ;;  %s1548_s24 = sphi %s1612_s24, %s1867_s24  }
   0x5   : > { %s1637_s30 = sadd.s32 1, %s1560_s27   ;;  %s180_s8 = sadd.s32 1, %s1556_s26 }
   0x6   : > { %s177_s9 = ssub.s32 %s1560_s27, %s1637_s30  ;;  %p190_p0 = scmp.ne.s32.totalorder %s1556_s26, %s1552_s25 }
   0x7   : > { %p178_p1 = scmp.eq.s32.totalorder %s177_s9, 0  ;;  %p191_p2 = scmp.eq.s32.totalorder %s1633_s28, 1 }
   0x8   : > { %p196_p3 = scmp.ne.s32.totalorder %s1552_s25, %s1548_s24  ;;  %p197_p4 = scmp.eq.s32.totalorder %s1096_s29, 1 }
   0x9   : > { %s1648_s10 = scalar_select %p178_p1, %s1556_s26, %s180_s8  }
   0xa   : > { %p1650_p5 = por %p191_p2, %p190_p0  ;;  %p1654_p6 = por %p197_p4, %p196_p3 }
   0xb   : > { %p1097_p7 = scmp.ge.s32.totalorder %s1560_s27, 1  ;;  %p204_p8 = scmp.lt.s32.totalorder %s1560_s27, 3 }
   0xc   : > { %s1858_s11 = scalar_select %p1650_p5, 1, 0 }
   0xd   : > { %s1859_s12 = scalar_select %p1654_p6, 1, 0 }
   0xe   : > { %p1855_p9 = scmp.eq.s32.totalorder %s1633_s28, 0  ;;  %p1661_p10 = pnand %p1097_p7, %p204_p8 }
   0xf   : > { %s1562_s14 = smov [#allocation2]   ;;  %s1466_s19 = scalar_lea.hbm %s1848_s1, 6144 }
  0x10   : > { %s1860_s13 = scalar_select %p1661_p10, 1, 0 }
  0x11   : > { %s216_s15 = sshll.u32 %s1562_s14, 4  ;;  %p1413_p11 = pneg %p1661_p10  ;;  %s217_s15 = int_to_ptr.vmem [resolvable:$true] %s216_s15 }
  0x12   : > { %p1467_p13 = scmp.ne.s32.totalorder %s1848_s1, %s1466_s19  ;;  %p1473_p3 = scmp.lt.u32.totalorder %s1466_s19, %s1848_s1 }
  0x13   : > { %p1669_p12 = pnand %p1855_p9, %p1413_p11 }
  0x15   : > { %p1468_p0 = pneg %p1669_p12 }
  0x17   : > { %p1469_p1 = pnand %p1468_p0, %p1467_p13 }
  0x19   : > { %p1470_p2 = pneg %p1469_p1 }
  0x1b   : > { %p1475_p4 = pnand %p1473_p3, %p1470_p2 }
  0x1d   : > { %1478 = shalt.err (!%p1475_p4)
}
  0x1e   : > { %s1479_s29 = scalar_lea.vmem %s217_s15, 6144  ;;  %p1487_p9 = scmp.lt.s32.totalorder %s217_s15, %s217_s15 }
  0x1f   : > { %p1480_p7 = scmp.ne.s32.totalorder %s217_s15, %s1479_s29  ;;  %p1488_p6 = scmp.lt.s32.totalorder %s1479_s29, %s1479_s29 }
  0x21   : > { %p1482_p8 = pnand %p1480_p7, %p1468_p0  ;;  %p1489_p5 = por %p1488_p6, %p1487_p9 }
  0x23   : > { %p1483_p11 = pneg %p1482_p8 }
  0x25   : > { %p1490_p10 = pnand %p1489_p5, %p1483_p11 }
  0x27   : > { %1493 = shalt.err (!%p1490_p10)
}
  0x28   : > { %s1563_s8 = smov 128   ;;  %s1564_s9 = smov 8  }
  0x29   : > { %1416 = dma.hbm_to_vmem [thread:$0]  (!%p1669_p12), %s1848_s1, 6144, %s217_s15, [#allocation3], %s1563_s8, %s1563_s8, %s1564_s9  }
  0x2a   : > { %p1862_p13 = scmp.ne.s32.totalorder %s1860_s13, 0 }
  0x2b   : > { %p1863_p1 = scmp.eq.s32.totalorder (!%p1862_p13), %s1633_s28, 0 }
  0x2c   : > { %254 = sbr.rel (%p1862_p13) target bundleno = 787 (0x313), region = 48 }
  0x33   : > { %1539 = dma.done.wait (%p1863_p1), [#allocation3], 6144   ;;  %p1864_p0 = pmov %p1863_p1 }
  0x34   : > { %v1565_v0 = vmov 0.0|0.0   ;;  %vm1566_vm0 = vmmov 0   ;;  %v1567_v1 = vmov 0.0   ;;  %v290_v2 = vld [vmem:[#allocation2] sm:$0xff]  ;;  %v291_v3 = vld [vmem:[#allocation2 + $0x8] sm:$0xff]  ;;  %v292_v4 = vld [vmem:[#allocation2 + $0x10] sm:$0xff] }
  0x35   : > { %1541 = vsyncadd (%p1864_p0), [#allocation3], 4294961152  ;;  %1323 = vmatprep.subr.bf16.mxu0 %v1565_v0  ;;  %1347 = vmatprep.subr.bf16.mxu1 %v1565_v0  ;;  %v1324_v5 = vpack.c.bf16 %v291_v3, %v290_v2  ;;  %v293_v6 = vld [vmem:[#allocation2 + $0x18] sm:$0xff]  ;;  %v294_v8 = vld [vmem:[#allocation2 + $0x20] sm:$0xff]  ;;  %p285_p5 = scmp.lt.s32.totalorder %s1633_s28, 1  ;;  %vm564_vm1 = vcmask 31744  }
  0x36   : > { %1223 = vmatprep.mubr.msk.f32.mxu0 %vm1566_vm0, %v1567_v1  ;;  %1258 = vmatprep.mubr.msk.f32.mxu1 %vm1566_vm0, %v1567_v1  ;;  %v1327_v7 = vpack.c.bf16 %v293_v6, %v292_v4  ;;  %v295_v9 = vld [vmem:[#allocation2 + $0x28] sm:$0xff]  ;;  %v377_v10 = vld [vmem:[#allocation2 + $0x80] sm:$0xff]  ;;  %v379_v13 = vld [vmem:[#allocation2 + $0x90] sm:$0xff]  ;;  %vm571_vm2 = vcmask 1043456   ;;  %vm910_vm3 = vcmask 130048   ;;  %s282_s20 = sand.u32 1, %s1552_s25  }
  0x37   : > { %1325 = vmatpush3.bf16.msra.mxu0 %v1324_v5  ;;  %v378_v11 = vld [vmem:[#allocation2 + $0x88] sm:$0xff]  ;;  %v380_v14 = vld [vmem:[#allocation2 + $0x98] sm:$0xff]  ;;  %v1330_v15 = vpack.c.bf16 %v295_v9, %v294_v8  ;;  %v296_v16 = vld [vmem:[#allocation2 + $0x30] sm:$0xff]  ;;  %s286_s13 = scalar_select %p285_p5, %s1633_s28, 1 }
  0x38   : > { %1326 = vmatprep.subr.bf16.mxu0 %v1565_v0  ;;  %v1348_v12 = vpack.c.bf16 %v378_v11, %v377_v10  ;;  %v1351_v17 = vpack.c.bf16 %v380_v14, %v379_v13  ;;  %v297_v18 = vld [vmem:[#allocation2 + $0x38] sm:$0xff]  ;;  %v381_v19 = vld [vmem:[#allocation2 + $0xa0] sm:$0xff]  ;;  %v382_v20 = vld [vmem:[#allocation2 + $0xa8] sm:$0xff]  ;;  %s1102_s21 = sshll.u32 %s282_s20, 4  ;;  %s1123_s29 = sshll.u32 %s1633_s28, 8 }
  0x39   : > { %v1333_v21 = vpack.c.bf16 %v297_v18, %v296_v16  ;;  %v298_v22 = vld [vmem:[#allocation2 + $0x40] sm:$0xff]  ;;  %v1354_v23 = vpack.c.bf16 %v382_v20, %v381_v19  ;;  %v299_v24 = vld [vmem:[#allocation2 + $0x48] sm:$0xff]  ;;  %v383_v25 = vld [vmem:[#allocation2 + $0xb0] sm:$0xff]  ;;  %s1103_s15 = sshll.u32 %s286_s13, 2  ;;  %s284_s22 = scalar_lea.vmem [#allocation5], %s1102_s21 }
  0x3a   : > { %1349 = vmatpush3.bf16.msra.mxu1 %v1348_v12  ;;  %v384_v26 = vld [vmem:[#allocation2 + $0xb8] sm:$0xff]  ;;  %v1336_v27 = vpack.c.bf16 %v299_v24, %v298_v22  ;;  %v300_v28 = vld [vmem:[#allocation2 + $0x50] sm:$0xff]  ;;  %v385_v31 = vld [vmem:[#allocation2 + $0xc0] sm:$0xff]  ;;  %s288_s19 = scalar_lea.vmem %s1847_s0, %s1103_s15  ;;  %s1022_s23 = sshll.u32 %s284_s22, 4  ;;  %s1799_s23 = int_to_ptr.vmem [resolvable:$true] %s1022_s23 }
  0x3b   : > { %1328 = vmatpush3.bf16.msra.mxu0 %v1327_v7  ;;  %1350 = vmatprep.subr.bf16.mxu1 %v1565_v0  ;;  %v1357_v29 = vpack.c.bf16 %v384_v26, %v383_v25  ;;  %v301_v30 = vld [vmem:[#allocation2 + $0x58] sm:$0xff]  ;;  %v386_v32 = vld [vmem:[#allocation2 + $0xc8] sm:$0xff]  ;;  %v302_v34 = vld [vmem:[#allocation2 + $0x60] sm:$0xff]  ;;  %s1804_s14 = scalar_lea.hbm %s1854_s7, %s1123_s29  ;;  %s1806_s17 = scalar_lea.sflag [#allocation4], %s282_s20 }
  0x3c   : > { %1329 = vmatprep.subr.bf16.mxu0 %v1565_v0  ;;  %v1339_v33 = vpack.c.bf16 %v301_v30, %v300_v28  ;;  %v1360_v35 = vpack.c.bf16 %v386_v32, %v385_v31  ;;  %v303_v36 = vld [vmem:[#allocation2 + $0x68] sm:$0xff]  ;;  %v387_v37 = vld [vmem:[#allocation2 + $0xd0] sm:$0xff]  ;;  %v388_v38 = vld [vmem:[#allocation2 + $0xd8] sm:$0xff]  ;;  %s1494_s28 = scalar_lea.vmem %s1799_s23, 256  ;;  %p1865_p9 = scmp.ne.s32.totalorder %s1858_s11, 0 }
  0x3d   : > { %v1342_v39 = vpack.c.bf16 %v303_v36, %v302_v34  ;;  %v304_v40 = vld [vmem:[#allocation2 + $0x70] sm:$0xff]  ;;  %v1363_v41 = vpack.c.bf16 %v388_v38, %v387_v37  ;;  %v305_v42 = vld [vmem:[#allocation2 + $0x78] sm:$0xff]  ;;  %v389_v43 = vld [vmem:[#allocation2 + $0xe0] sm:$0xff]  ;;  %p1495_p6 = scmp.ne.s32.totalorder %s1799_s23, %s1494_s28  ;;  %s1569_s13 = smov [#allocation5]  }
  0x3e   : > { %1352 = vmatpush3.bf16.msra.mxu1 %v1351_v17  ;;  %v390_v44 = vld [vmem:[#allocation2 + $0xe8] sm:$0xff]  ;;  %v1345_v45 = vpack.c.bf16 %v305_v42, %v304_v40  ;;  %v464_v46 = vld [vmem:[#allocation2 + $0x100] sm:$0xff]  ;;  %v391_v49 = vld [vmem:[#allocation2 + $0xf0] sm:$0xff]  ;;  %s1498_s15 = sshll.u32 %s1569_s13, 4  ;;  %s1499_s15 = int_to_ptr.vmem [resolvable:$false] %s1498_s15 }
  0x3f   : > { %1331 = vmatpush3.bf16.msra.mxu0 %v1330_v15  ;;  %1353 = vmatprep.subr.bf16.mxu1 %v1565_v0  ;;  %v1366_v47 = vpack.c.bf16 %v390_v44, %v389_v43  ;;  %v465_v48 = vld [vmem:[#allocation2 + $0x108] sm:$0xff]  ;;  %v392_v50 = vld [vmem:[#allocation2 + $0xf8] sm:$0xff]  ;;  %v1719_v51 = vld [vmem:[%s288_s19] sm:$0xf]  ;;  %p1496_p10 = pnand %p1495_p6, %p1865_p9  ;;  %s1500_s16 = scalar_lea.vmem %s1499_s15, 512 }
  0x40   : > { %1332 = vmatprep.subr.bf16.mxu0 %v1565_v0  ;;  %v1372_v52 = vpack.c.bf16 %v465_v48, %v464_v46  ;;  %v1369_v53 = vpack.c.bf16 %v392_v50, %v391_v49  ;;  %v466_v54 = vld [vmem:[#allocation2 + $0x110] sm:$0xff]  ;;  %v467_v55 = vld [vmem:[#allocation2 + $0x118] sm:$0xff]  ;;  %v468_v57 = vld [vmem:[#allocation2 + $0x120] sm:$0xff]  ;;  %p1501_p2 = scmp.lt.s32.totalorder %s1799_s23, %s1499_s15  ;;  %p1502_p3 = scmp.lt.s32.totalorder %s1500_s16, %s1494_s28 }
  0x41   : > { %v1375_v56 = vpack.c.bf16 %v467_v55, %v466_v54  ;;  %v469_v58 = vld [vmem:[#allocation2 + $0x128] sm:$0xff]  ;;  %v470_v60 = vld [vmem:[#allocation2 + $0x130] sm:$0xff]  ;;  %v471_v61 = vld [vmem:[#allocation2 + $0x138] sm:$0xff]  ;;  %p1497_p12 = pneg %p1496_p10 }
  0x42   : > { %1355 = vmatpush3.bf16.msra.mxu1 %v1354_v23  ;;  %v1378_v59 = vpack.c.bf16 %v469_v58, %v468_v57  ;;  %v1381_v62 = vpack.c.bf16 %v471_v61, %v470_v60  ;;  %v472_v63 = vld [vmem:[#allocation2 + $0x140] sm:$0xff]  ;;  %v473_v2 = vld [vmem:[#allocation2 + $0x148] sm:$0xff]  ;;  %v474_v4 = vld [vmem:[#allocation2 + $0x150] sm:$0xff]  ;;  %p1503_p4 = por %p1502_p3, %p1501_p2 }
  0x43   : > { %1334 = vmatpush3.bf16.msra.mxu0 %v1333_v21  ;;  %1356 = vmatprep.subr.bf16.mxu1 %v1565_v0  ;;  %v1384_v3 = vpack.c.bf16 %v473_v2, %v472_v63  ;;  %v476_v6 = vld [vmem:[#allocation2 + $0x160] sm:$0xff]  ;;  %v477_v7 = vld [vmem:[#allocation2 + $0x168] sm:$0xff]  ;;  %v478_v9 = vld [vmem:[#allocation2 + $0x170] sm:$0xff] }
  0x44   : > { %1335 = vmatprep.subr.bf16.mxu0 %v1565_v0  ;;  %v1390_v8 = vpack.c.bf16 %v477_v7, %v476_v6  ;;  %v479_v10 = vld [vmem:[#allocation2 + $0x178] sm:$0xff]  ;;  %v550_v12 = vld [vmem:[%s1849_s2] sm:$0xff]  ;;  %v551_v14 = vld [vmem:[%s1849_s2 + $0x8] sm:$0xff]  ;;  %p1504_p7 = pnand %p1503_p4, %p1497_p12 }
  0x45   : > { %v1393_v11 = vpack.c.bf16 %v479_v10, %v478_v9  ;;  %v553_v18 = vld [vmem:[%s1849_s2 + $0x18] sm:$0xff]  ;;  %v554_v19 = vld [vmem:[%s1849_s2 + $0x20] sm:$0xff]  ;;  %v555_v21 = vld [vmem:[%s1849_s2 + $0x28] sm:$0xff] }
  0x46   : > { %1358 = vmatpush3.bf16.msra.mxu1 %v1357_v29  ;;  %v556_v23 = vld [vmem:[%s1850_s3] sm:$0xff]  ;;  %v557_v24 = vld [vmem:[%s1850_s3 + $0x8] sm:$0xff] }
  0x47   : > { %1337 = vmatpush3.bf16.msra.mxu0 %v1336_v27  ;;  %1359 = vmatprep.subr.bf16.mxu1 %v1565_v0  ;;  %v558_v25 = vld [vmem:[%s1851_s4] sm:$0xff]  ;;  %v1568_v27 = vmov 0   ;;  %v563_v28 = vld [vmem:[%s1853_s6 + $0x8] sm:$0xff] }
  0x48   : > { %1338 = vmatprep.subr.bf16.mxu0 %v1565_v0  ;;  %v562_v26 = vld [vmem:[%s1853_s6] sm:$0xff]  ;;  %1465 = vset.pattern.permute.xlu0 %v1568_v27  ;;  %v561_v29 = vld [vmem:[%s1852_s5 + $0x8] sm:$0xff] }
  0x49   : > { %994 = vperm.xlu0 %1465, %v562_v26   ;;  %v560_v30 = vld [vmem:[%s1852_s5] sm:$0xff]  ;;  %v559_v38 = vld [vmem:[%s1851_s4 + $0x8] sm:$0xff] }
  0x4a   : > { %1361 = vmatpush3.bf16.msra.mxu1 %v1360_v35 }
  0x4b   : > { %1340 = vmatpush3.bf16.msra.mxu0 %v1339_v33  ;;  %1362 = vmatprep.subr.bf16.mxu1 %v1565_v0 }
  0x4c   : > { %1341 = vmatprep.subr.bf16.mxu0 %v1565_v0 }
  0x4d   : > { %999 = vperm.xlu0 %1465, %v563_v28  }
  0x4e   : > { %1364 = vmatpush3.bf16.msra.mxu1 %v1363_v41 }
  0x4f   : > { %1343 = vmatpush3.bf16.msra.mxu0 %v1342_v39  ;;  %1365 = vmatprep.subr.bf16.mxu1 %v1565_v0 }
  0x50   : > { %1344 = vmatprep.subr.bf16.mxu0 %v1565_v0 }
  0x52   : > { %1367 = vmatpush3.bf16.msra.mxu1 %v1366_v47 }
  0x53   : > { %1346 = vmatpush3.bf16.msra.mxu0 %v1345_v45  ;;  %1368 = vmatprep.subr.bf16.mxu1 %v1565_v0 }
  0x54   : > { %1371 = vmatprep.subr.bf16.mxu0 %v1565_v0 }
  0x56   : > { %1224 = vmatmul.mubr.f32.vlgmr.msra.gmra.mrb[0].mxu0 %v1719_v51  ;;  %1370 = vmatpush3.bf16.msra.mxu1 %v1369_v53 }
  0x57   : > { %1373 = vmatpush3.bf16.msra.mxu0 %v1372_v52  ;;  %1293 = vmatprep.mubr.msk.f32.mxu0 %vm1566_vm0, %v1567_v1  ;;  %v475_v1 = vld [vmem:[#allocation2 + $0x158] sm:$0xff] }
  0x58   : > { %1374 = vmatprep.subr.bf16.mxu0 %v1565_v0  ;;  %v1387_v5 = vpack.c.bf16 %v475_v1, %v474_v4 }
  0x59   : > { %1259 = vmatmul.mubr.f32.vlgmr.msra.gmra.mrb[0].mxu1 %v1719_v51 }
  0x5a   : > { %1298 = vmatprep.mubr.msk.f32.mxu1 %vm564_vm1, %v550_v12 }
  0x5b   : > { %1376 = vmatpush3.bf16.msra.mxu0 %v1375_v56 }
  0x5c   : > { %1377 = vmatprep.subr.bf16.mxu0 %v1565_v0 }
  0x5f   : > { %1379 = vmatpush3.bf16.msra.mxu0 %v1378_v59 }
  0x60   : > { %1380 = vmatprep.subr.bf16.mxu0 %v1565_v0 }
  0x63   : > { %1382 = vmatpush3.bf16.msra.mxu0 %v1381_v62 }
  0x64   : > { %1383 = vmatprep.subr.bf16.mxu0 %v1565_v0 }
  0x67   : > { %1385 = vmatpush3.bf16.msra.mxu0 %v1384_v3 }
  0x68   : > { %1386 = vmatprep.subr.bf16.mxu0 %v1565_v0 }
  0x6b   : > { %1388 = vmatpush3.bf16.msra.mxu0 %v1387_v5 }
  0x6c   : > { %1389 = vmatprep.subr.bf16.mxu0 %v1565_v0 }
  0x6f   : > { %1391 = vmatpush3.bf16.msra.mxu0 %v1390_v8 }
  0x70   : > { %1392 = vmatprep.subr.bf16.mxu0 %v1565_v0  ;;  %v552_v0 = vld [vmem:[%s1849_s2 + $0x10] sm:$0xff] }
  0x73   : > { %1394 = vmatpush3.bf16.msra.mxu0 %v1393_v11 }
  0x76   : > { %1294 = vmatmul.mubr.f32.vlgmr.msra.gmra.mrb[2].mxu0 %v1719_v51 }
  0xc8   : > { %v995_v39 = vpop.permute.xlu0 %994 }
  0xcc   : > { %v1000_v40 = vpop.permute.xlu0 %999 }
 0x129   : > { %v372_v13 = vpop.f32.mrb[0].mxu0 }
 0x12a   : > { %v1225_v15 = vpop.f32.mrb[1].mxu0  ;;  %1296 = vmatprep.subr.msk.mxu1 %vm571_vm2, %v372_v13 }
 0x12b   : > { %1297 = vmatpush3.msk.msra.mxu1 %vm571_vm2, %v372_v13 }
 0x12c   : > { %1299 = vmatmul.mubr.msk.f32.vlgmr.msra.gmra.mrb[2].mxu1 %vm564_vm1, %v551_v14  ;;  %v459_v16 = vpop.f32.mrb[0].mxu1 }
 0x12d   : > { %1303 = vmatprep.mubr.msk.f32.mxu1 %vm564_vm1, %v552_v0  ;;  %v1260_v17 = vpop.f32.mrb[1].mxu1  ;;  %1301 = vmatprep.subr.msk.mxu1 %vm571_vm2, %v459_v16 }
 0x12e   : > { %1302 = vmatpush3.msk.msra.mxu1 %vm571_vm2, %v459_v16 }
 0x134   : > { %1304 = vmatmul.mubr.msk.f32.vlgmr.msra.gmra.mrb[2].mxu1 %vm564_vm1, %v553_v18 }
 0x135   : > { %1308 = vmatprep.mubr.msk.f32.mxu1 %vm564_vm1, %v554_v19 }
 0x149   : > { %v546_v20 = vpop.f32.mrb[2].mxu0 }
 0x14a   : > { %v1295_v22 = vpop.f32.mrb[3].mxu0  ;;  %1306 = vmatprep.subr.msk.mxu1 %vm571_vm2, %v546_v20 }
 0x14b   : > { %1307 = vmatpush3.msk.msra.mxu1 %vm571_vm2, %v546_v20 }
 0x14c   : > { %1309 = vmatmul.mubr.msk.f32.vlgmr.msra.gmra.mrb[2].mxu1 %vm564_vm1, %v555_v21  ;;  %1311 = vmatprep.subr.msk.mxu1 %vm571_vm2, %v1719_v51 }
 0x14d   : > { %1312 = vmatpush3.msk.msra.mxu1 %vm571_vm2, %v1719_v51  ;;  %1313 = vmatprep.mubr.msk.f32.mxu1 %vm564_vm1, %v556_v23 }
 0x150   : > { %1314 = vmatmul.mubr.msk.f32.vlgmr.msra.gmra.mrb[4].mxu1 %vm564_vm1, %v557_v24 }
 0x151   : > { %1320 = vmatprep.mubr.msk.f32.mxu1 %vm910_vm3, %v558_v25 }
 0x21f   : > { %v1310_v31 = vpop.f32.mrb[2].mxu1 }
 0x220   : > { %v1399_v32 = vadd.f32 %v1310_v31, %v561_v29  ;;  %v813_v33 = vpop.f32.mrb[3].mxu1 }
 0x221   : > { %v1400_v34 = vadd.f32 %v813_v33, %v560_v30 }
 0x222   : > { %v825_v35 = vmax.f32 %v1399_v32, 0.0 }
 0x223   : > { %v824_v36 = vmax.f32 %v1400_v34, 0.0 }
 0x225   : > { %v1395_v37 = vpack.c.bf16 %v825_v35, %v824_v36 }
 0x227   : > { %1396 = vmatprep.subr.bf16.mxu1 %v1395_v37 }
 0x228   : > { %1398 = vmatpush3.bf16.msra.mxu1 %v1395_v37 }
 0x22b   : > { %1321 = vmatmul.mubr.msk.f32.vlgmr.msra.gmra.mrb[4].mxu1 %vm910_vm3, %v559_v38 }
 0x2fe   : > { %v1322_v41 = vpop.f32.mrb[4].mxu1 }
 0x2ff   : > { %v1003_v42 = vadd.f32 %v1322_v41, %v1000_v40  ;;  %v983_v43 = vpop.f32.mrb[5].mxu1 }
 0x300   : > { %v1002_v44 = vadd.f32 %v995_v39, %v983_v43 }
 0x301   : > { %v1005_v45 = vmax.f32 %v1003_v42, 0.0 }
 0x302   : > { %v1004_v46 = vmax.f32 %v1002_v44, 0.0 }
 0x303   : > { %1007 = vst [vmem:[%s284_s22 + $0x8] sm:$0xff] %v1005_v45 }
 0x304   : > { %1006 = vst [vmem:[%s284_s22] sm:$0xff] %v1004_v46 }
 0x305   : > { %1507 = shalt.err (!%p1504_p7)
}
 0x306   : > { %s1508_s18 = scalar_lea.hbm %s1804_s14, 256  ;;  %s1512_s21 = scalar_lea.hbm %s1854_s7, 512 }
 0x307   : > { %p1509_p8 = scmp.ne.s32.totalorder %s1804_s14, %s1508_s18  ;;  %p1513_p1 = scmp.lt.u32.totalorder %s1804_s14, %s1854_s7 }
 0x308   : > { %p1514_p0 = scmp.lt.u32.totalorder %s1512_s21, %s1508_s18  ;;  %p1516_p6 = scmp.lt.u32.totalorder %s1508_s18, %s1804_s14 }
 0x309   : > { %p1510_p11 = pnand %p1509_p8, %p1865_p9 }
 0x30a   : > { %p1515_p5 = por %p1514_p0, %p1513_p1 }
 0x30b   : > { %p1511_p13 = pneg %p1510_p11 }
 0x30c   : > { %p1517_p10 = por %p1516_p6, %p1515_p5 }
 0x30e   : > { %p1518_p12 = pnand %p1517_p10, %p1511_p13 }
 0x310   : > { %1521 = shalt.err (!%p1518_p12)
}
 0x311   : > { %s1570_s8 = smov 128   ;;  %s1571_s9 = smov 8  }
 0x312   : > { %1411 = dma.vmem_to_hbm [thread:$0]  (%p1865_p9), %s1799_s23, 256, %s1804_s14, %s1806_s17, %s1570_s8, %s1570_s8, %s1571_s9  }
 0x313 PF: > { %p1423_p2 = scmp.ge.s32.totalorder %s1560_s27, 2  ;;  %s1037_s28 = sand.u32 1, %s1548_s24  }
 0x314   : > { %p1866_p3 = scmp.ne.s32.totalorder %s1859_s12, 0  ;;  %s1038_s13 = scalar_lea.sflag [#allocation4], %s1037_s28 }
 0x316   : > { %p1418_p4 = pnand %p1423_p2, %p1866_p3 }
 0x318   : > { %1543 = dma.done.wait (!%p1418_p4), %s1038_s13, 256  }
 0x319   : > { %1545 = vsyncadd (!%p1418_p4), %s1038_s13, 4294967040  ;;  %p18_p7 = scmp.ge.s32.totalorder %s1637_s30, 4   ;;  %s1867_s24 = smov %s1552_s25 }
 0x31a   : > { %s1868_s25 = smov %s1556_s26  ;;  %s1869_s26 = smov %s1648_s10 }
 0x31b   : > { %s1870_s27 = smov %s1637_s30  ;;  %20 = sbr.rel (!%p18_p7) target bundleno = 4 (0x4), region = 90 }
 0x322   :  { %1043 = vsyncpa [#allocation3], 1 }
 0x323   :  { %1045 = vsyncpa [#allocation3 + $0x1], 1 }
 0x324   :  { %1046 = vsyncpa [#allocation4], 1 }
 0x325   :  { %1048 = vsyncpa [#allocation4 + $0x1], 1 }

</bundles_post_ra>
